<compile_context>
chip_gen: v7x
topology: tpu7x:2x2x1
jax: 0.10.0
libtpu: 0.0.40
codegen_flags: <defaults>
</compile_context>

<pallas_src>
import functools

import jax
import jax.numpy as jnp
from jax import lax
from jax.experimental import pallas as pl
from jax.experimental.pallas import tpu as pltpu

BN_EPS = 1e-5
LANE = 128  # lane width; also the padded K of layer 1 and padded N of the fused heads


def _bn_relu(h):
    """Training-mode BatchNorm1d (gamma=1, beta=0) + ReLU over axis 0 (one-pass stats)."""
    inv_b = 1.0 / h.shape[0]
    s1 = jnp.sum(h, axis=0, keepdims=True)
    s2 = jnp.sum(h * h, axis=0, keepdims=True)
    mean = s1 * inv_b
    var = jnp.maximum(s2 * inv_b - mean * mean, 0.0)  # clamp rounding negatives
    return jnp.maximum((h - mean) * lax.rsqrt(var + BN_EPS), 0.0)


def multitask_kernel(
    x_ref,
    w1_ref, b1_ref,
    w2_ref, b2_ref,
    w3_ref, b3_ref,
    wh_ref, bh_ref,
    out_ref,
):
    # trunk: Linear -> BN -> ReLU, three times. bf16 operands on the MXU, f32 accumulate.
    h = jnp.dot(x_ref[...], w1_ref[...], preferred_element_type=jnp.float32) + b1_ref[...]
    h = _bn_relu(h)
    h = jnp.dot(h.astype(jnp.bfloat16), w2_ref[...],
                preferred_element_type=jnp.float32) + b2_ref[...]
    h = _bn_relu(h)
    h = jnp.dot(h.astype(jnp.bfloat16), w3_ref[...],
                preferred_element_type=jnp.float32) + b3_ref[...]
    h = _bn_relu(h)

    # all six heads fused: one [B,128] x [128,128] matmul, one lane-dense store.
    out_ref[...] = (
        jnp.dot(h.astype(jnp.bfloat16), wh_ref[...], preferred_element_type=jnp.float32)
        + bh_ref[...]
    )


def kaiming_uniform(key, out_features, in_features):
    """PyTorch nn.init.kaiming_uniform_(w, nonlinearity='relu'):
    gain = sqrt(2), bound = sqrt(3) * gain / sqrt(fan_in).
    Stored pre-transposed [in_features, out_features] so the kernel computes x @ W."""
    bound = jnp.sqrt(3.0) * jnp.sqrt(2.0) / jnp.sqrt(float(in_features))
    return jax.random.uniform(
        key, (in_features, out_features), dtype=jnp.float32, minval=-bound, maxval=bound
    )


def init_params(key, input_size, head_sizes):
    sizes = [(input_size, 512), (512, 256), (256, 128)] + [(128, c) for c in head_sizes]
    keys = jax.random.split(key, len(sizes))
    params = []
    for k, (fin, fout) in zip(keys, sizes):
        w = kaiming_uniform(k, fout, fin)
        b = jnp.zeros((1, fout), dtype=jnp.float32)  # (1, N) broadcasts over batch
        params.append((w, b))
    return params


def prepare_params(params, input_size):
    """Host-side packing: pad w1's K dim to 128 with zero rows, fuse the 6 head
    weights/biases into one [128, 128]-padded matrix, cast weights to bf16."""
    (w1, b1), (w2, b2), (w3, b3) = params[:3]
    heads = params[3:]

    w1p = jnp.zeros((LANE, 512), jnp.float32).at[:input_size].set(w1)

    wh = jnp.concatenate([w for w, _ in heads], axis=1)  # [128, sum(head_sizes)]
    bh = jnp.concatenate([b for _, b in heads], axis=1)  # [1,   sum(head_sizes)]
    total = wh.shape[1]
    wh = jnp.pad(wh, ((0, 0), (0, LANE - total)))
    bh = jnp.pad(bh, ((0, 0), (0, LANE - total)))

    bf16 = lambda w: w.astype(jnp.bfloat16)
    return (bf16(w1p), b1, bf16(w2), b2, bf16(w3), b3, bf16(wh), bh)


@functools.partial(jax.jit, static_argnames=("head_sizes",))
def multitask_forward(x, w1, b1, w2, b2, w3, b3, wh, bh, *, head_sizes):
    B, F_in = x.shape
    # zero-pad the contraction dim of x to 128 lanes (w1 already padded host-side)
    if F_in < LANE:
        x = jnp.pad(x, ((0, 0), (0, LANE - F_in)))
    x = x.astype(jnp.bfloat16)

    flops = 2 * B * (LANE * 512 + 512 * 256 + 256 * 128 + 128 * LANE)
    bytes_accessed = (
        x.size * 2
        + (w1.size + w2.size + w3.size + wh.size) * 2
        + (b1.size + b2.size + b3.size + bh.size) * 4
        + B * LANE * 4
    )

    vmem = pl.BlockSpec(memory_space=pltpu.MemorySpace.VMEM)
    out = pl.pallas_call(
        multitask_kernel,
        out_shape=jax.ShapeDtypeStruct((B, LANE), jnp.float32),
        in_specs=[vmem] * 9,
        out_specs=vmem,
        cost_estimate=pl.CostEstimate(
            flops=flops,
            transcendentals=512 + 256 + 128,  # one rsqrt per BN feature
            bytes_accessed=bytes_accessed,
        ),
    )(x, w1, b1, w2, b2, w3, b3, wh, bh)

    # slice the fused head output back into the six task logit tensors
    outs, start = [], 0
    for c in head_sizes:
        outs.append(lax.slice_in_dim(out, start, start + c, axis=1))
        start += c
    return tuple(outs)


def reference_forward(x, packed, head_sizes):
    """Pure-JAX reference with the same bf16 operand / f32 accumulation recipe."""
    w1, b1, w2, b2, w3, b3, wh, bh = packed
    xp = jnp.pad(x, ((0, 0), (0, LANE - x.shape[1]))).astype(jnp.bfloat16)

    def bn_relu(h):
        m = jnp.mean(h, axis=0, keepdims=True)
        v = jnp.mean((h - m) ** 2, axis=0, keepdims=True)
        return jnp.maximum((h - m) * lax.rsqrt(v + BN_EPS), 0.0)

    h = bn_relu(jnp.dot(xp, w1, preferred_element_type=jnp.float32) + b1)
    h = bn_relu(jnp.dot(h.astype(jnp.bfloat16), w2, preferred_element_type=jnp.float32) + b2)
    h = bn_relu(jnp.dot(h.astype(jnp.bfloat16), w3, preferred_element_type=jnp.float32) + b3)
    out = jnp.dot(h.astype(jnp.bfloat16), wh, preferred_element_type=jnp.float32) + bh

    outs, s = [], 0
    for c in head_sizes:
        outs.append(out[:, s:s + c])
        s += c
    return tuple(outs)


if __name__ == "__main__":
    # small, deterministic example consistent with the module
    B = 8
    input_size = 32
    head_sizes = (8, 4, 3, 2, 2, 4)  # action, bodypart, offence, touchball, trytoplay, severity

    key = jax.random.PRNGKey(0)
    k_x, k_p = jax.random.split(key)
    x = jax.random.normal(k_x, (B, input_size), dtype=jnp.float32)

    params = init_params(k_p, input_size, head_sizes)
    packed = prepare_params(params, input_size)

    outs = multitask_forward(x, *packed, head_sizes=head_sizes)
    outs = jax.block_until_ready(outs)

    # sanity: shapes / dtypes match the PyTorch module's 6 outputs
    assert len(outs) == 6
    for o, c in zip(outs, head_sizes):
        assert o.shape == (B, c) and o.dtype == jnp.float32

    # numerical sanity vs. a pure-JAX reference using the same bf16 packing
    refs = reference_forward(x, packed, head_sizes)
    for o, r in zip(outs, refs):
        assert jnp.allclose(o, r, atol=1e-2, rtol=1e-2)

    print("KERNEL_OK")
</pallas_src>

<mosaic_0001>
module attributes {stable_mosaic.version = 11 : i64} {
  func.func @multitask_kernel(%arg0: memref<8x128xbf16, #tpu.memory_space<vmem>>, %arg1: memref<128x512xbf16, #tpu.memory_space<vmem>>, %arg2: memref<1x512xf32, #tpu.memory_space<vmem>>, %arg3: memref<512x256xbf16, #tpu.memory_space<vmem>>, %arg4: memref<1x256xf32, #tpu.memory_space<vmem>>, %arg5: memref<256x128xbf16, #tpu.memory_space<vmem>>, %arg6: memref<1x128xf32, #tpu.memory_space<vmem>>, %arg7: memref<128x128xbf16, #tpu.memory_space<vmem>>, %arg8: memref<1x128xf32, #tpu.memory_space<vmem>>, %arg9: memref<8x128xf32, #tpu.memory_space<vmem>>) attributes {dimension_semantics = [], scalar_prefetch = 0 : i64, scratch_operands = 0 : i64, tpu.core_type = #tpu.core_type<tc>} {
    %c0 = arith.constant 0 : index
    %c0_0 = arith.constant 0 : index
    %0 = vector.load %arg0[%c0, %c0_0] : memref<8x128xbf16, #tpu.memory_space<vmem>>, vector<8x128xbf16>
    %c0_1 = arith.constant 0 : index
    %c0_2 = arith.constant 0 : index
    %1 = vector.load %arg1[%c0_1, %c0_2] : memref<128x512xbf16, #tpu.memory_space<vmem>>, vector<128x512xbf16>
    %cst = arith.constant dense<0.000000e+00> : vector<8x512xf32>
    %2 = tpu.matmul %0, %1, %cst {dimension_numbers = #tpu.dot_dimension_numbers<[1], [0], [0], [1], [0, 0, 1, 1], [], []>} : vector<8x128xbf16>, vector<128x512xbf16>, vector<8x512xf32> -> vector<8x512xf32>
    %c0_3 = arith.constant 0 : index
    %c0_4 = arith.constant 0 : index
    %3 = vector.load %arg2[%c0_3, %c0_4] : memref<1x512xf32, #tpu.memory_space<vmem>>, vector<1x512xf32>
    %4 = vector.broadcast %3 : vector<1x512xf32> to vector<8x512xf32>
    %5 = arith.addf %2, %4 : vector<8x512xf32>
    %cst_5 = arith.constant dense<0.000000e+00> : vector<512xf32>
    %6 = vector.multi_reduction <add>, %5, %cst_5 [0] : vector<8x512xf32> to vector<512xf32>
    %7 = vector.shape_cast %6 : vector<512xf32> to vector<1x512xf32>
    %8 = arith.mulf %5, %5 : vector<8x512xf32>
    %cst_6 = arith.constant dense<0.000000e+00> : vector<512xf32>
    %9 = vector.multi_reduction <add>, %8, %cst_6 [0] : vector<8x512xf32> to vector<512xf32>
    %10 = vector.shape_cast %9 : vector<512xf32> to vector<1x512xf32>
    %cst_7 = arith.constant 1.250000e-01 : f32
    %11 = vector.broadcast %cst_7 : f32 to vector<1x512xf32>
    %12 = arith.mulf %7, %11 : vector<1x512xf32>
    %cst_8 = arith.constant 1.250000e-01 : f32
    %13 = vector.broadcast %cst_8 : f32 to vector<1x512xf32>
    %14 = arith.mulf %10, %13 : vector<1x512xf32>
    %15 = arith.mulf %12, %12 : vector<1x512xf32>
    %16 = arith.subf %14, %15 : vector<1x512xf32>
    %cst_9 = arith.constant 0.000000e+00 : f32
    %17 = vector.broadcast %cst_9 : f32 to vector<1x512xf32>
    %18 = arith.maximumf %16, %17 : vector<1x512xf32>
    %19 = vector.broadcast %12 : vector<1x512xf32> to vector<8x512xf32>
    %20 = arith.subf %5, %19 : vector<8x512xf32>
    %cst_10 = arith.constant 9.99999974E-6 : f32
    %21 = vector.broadcast %cst_10 : f32 to vector<1x512xf32>
    %22 = arith.addf %18, %21 : vector<1x512xf32>
    %23 = math.rsqrt %22 : vector<1x512xf32>
    %24 = vector.broadcast %23 : vector<1x512xf32> to vector<8x512xf32>
    %25 = arith.mulf %20, %24 : vector<8x512xf32>
    %cst_11 = arith.constant 0.000000e+00 : f32
    %26 = vector.broadcast %cst_11 : f32 to vector<8x512xf32>
    %27 = arith.maximumf %25, %26 : vector<8x512xf32>
    %28 = arith.truncf %27 : vector<8x512xf32> to vector<8x512xbf16>
    %c0_12 = arith.constant 0 : index
    %c0_13 = arith.constant 0 : index
    %29 = vector.load %arg3[%c0_12, %c0_13] : memref<512x256xbf16, #tpu.memory_space<vmem>>, vector<512x256xbf16>
    %cst_14 = arith.constant dense<0.000000e+00> : vector<8x256xf32>
    %30 = tpu.matmul %28, %29, %cst_14 {dimension_numbers = #tpu.dot_dimension_numbers<[1], [0], [0], [1], [0, 0, 1, 1], [], []>} : vector<8x512xbf16>, vector<512x256xbf16>, vector<8x256xf32> -> vector<8x256xf32>
    %c0_15 = arith.constant 0 : index
    %c0_16 = arith.constant 0 : index
    %31 = vector.load %arg4[%c0_15, %c0_16] : memref<1x256xf32, #tpu.memory_space<vmem>>, vector<1x256xf32>
    %32 = vector.broadcast %31 : vector<1x256xf32> to vector<8x256xf32>
    %33 = arith.addf %30, %32 : vector<8x256xf32>
    %cst_17 = arith.constant dense<0.000000e+00> : vector<256xf32>
    %34 = vector.multi_reduction <add>, %33, %cst_17 [0] : vector<8x256xf32> to vector<256xf32>
    %35 = vector.shape_cast %34 : vector<256xf32> to vector<1x256xf32>
    %36 = arith.mulf %33, %33 : vector<8x256xf32>
    %cst_18 = arith.constant dense<0.000000e+00> : vector<256xf32>
    %37 = vector.multi_reduction <add>, %36, %cst_18 [0] : vector<8x256xf32> to vector<256xf32>
    %38 = vector.shape_cast %37 : vector<256xf32> to vector<1x256xf32>
    %cst_19 = arith.constant 1.250000e-01 : f32
    %39 = vector.broadcast %cst_19 : f32 to vector<1x256xf32>
    %40 = arith.mulf %35, %39 : vector<1x256xf32>
    %cst_20 = arith.constant 1.250000e-01 : f32
    %41 = vector.broadcast %cst_20 : f32 to vector<1x256xf32>
    %42 = arith.mulf %38, %41 : vector<1x256xf32>
    %43 = arith.mulf %40, %40 : vector<1x256xf32>
    %44 = arith.subf %42, %43 : vector<1x256xf32>
    %cst_21 = arith.constant 0.000000e+00 : f32
    %45 = vector.broadcast %cst_21 : f32 to vector<1x256xf32>
    %46 = arith.maximumf %44, %45 : vector<1x256xf32>
    %47 = vector.broadcast %40 : vector<1x256xf32> to vector<8x256xf32>
    %48 = arith.subf %33, %47 : vector<8x256xf32>
    %cst_22 = arith.constant 9.99999974E-6 : f32
    %49 = vector.broadcast %cst_22 : f32 to vector<1x256xf32>
    %50 = arith.addf %46, %49 : vector<1x256xf32>
    %51 = math.rsqrt %50 : vector<1x256xf32>
    %52 = vector.broadcast %51 : vector<1x256xf32> to vector<8x256xf32>
    %53 = arith.mulf %48, %52 : vector<8x256xf32>
    %cst_23 = arith.constant 0.000000e+00 : f32
    %54 = vector.broadcast %cst_23 : f32 to vector<8x256xf32>
    %55 = arith.maximumf %53, %54 : vector<8x256xf32>
    %56 = arith.truncf %55 : vector<8x256xf32> to vector<8x256xbf16>
    %c0_24 = arith.constant 0 : index
    %c0_25 = arith.constant 0 : index
    %57 = vector.load %arg5[%c0_24, %c0_25] : memref<256x128xbf16, #tpu.memory_space<vmem>>, vector<256x128xbf16>
    %cst_26 = arith.constant dense<0.000000e+00> : vector<8x128xf32>
    %58 = tpu.matmul %56, %57, %cst_26 {dimension_numbers = #tpu.dot_dimension_numbers<[1], [0], [0], [1], [0, 0, 1, 1], [], []>} : vector<8x256xbf16>, vector<256x128xbf16>, vector<8x128xf32> -> vector<8x128xf32>
    %c0_27 = arith.constant 0 : index
    %c0_28 = arith.constant 0 : index
    %59 = vector.load %arg6[%c0_27, %c0_28] : memref<1x128xf32, #tpu.memory_space<vmem>>, vector<1x128xf32>
    %60 = vector.broadcast %59 : vector<1x128xf32> to vector<8x128xf32>
    %61 = arith.addf %58, %60 : vector<8x128xf32>
    %cst_29 = arith.constant dense<0.000000e+00> : vector<128xf32>
    %62 = vector.multi_reduction <add>, %61, %cst_29 [0] : vector<8x128xf32> to vector<128xf32>
    %63 = vector.shape_cast %62 : vector<128xf32> to vector<1x128xf32>
    %64 = arith.mulf %61, %61 : vector<8x128xf32>
    %cst_30 = arith.constant dense<0.000000e+00> : vector<128xf32>
    %65 = vector.multi_reduction <add>, %64, %cst_30 [0] : vector<8x128xf32> to vector<128xf32>
    %66 = vector.shape_cast %65 : vector<128xf32> to vector<1x128xf32>
    %cst_31 = arith.constant 1.250000e-01 : f32
    %67 = vector.broadcast %cst_31 : f32 to vector<1x128xf32>
    %68 = arith.mulf %63, %67 : vector<1x128xf32>
    %cst_32 = arith.constant 1.250000e-01 : f32
    %69 = vector.broadcast %cst_32 : f32 to vector<1x128xf32>
    %70 = arith.mulf %66, %69 : vector<1x128xf32>
    %71 = arith.mulf %68, %68 : vector<1x128xf32>
    %72 = arith.subf %70, %71 : vector<1x128xf32>
    %cst_33 = arith.constant 0.000000e+00 : f32
    %73 = vector.broadcast %cst_33 : f32 to vector<1x128xf32>
    %74 = arith.maximumf %72, %73 : vector<1x128xf32>
    %75 = vector.broadcast %68 : vector<1x128xf32> to vector<8x128xf32>
    %76 = arith.subf %61, %75 : vector<8x128xf32>
    %cst_34 = arith.constant 9.99999974E-6 : f32
    %77 = vector.broadcast %cst_34 : f32 to vector<1x128xf32>
    %78 = arith.addf %74, %77 : vector<1x128xf32>
    %79 = math.rsqrt %78 : vector<1x128xf32>
    %80 = vector.broadcast %79 : vector<1x128xf32> to vector<8x128xf32>
    %81 = arith.mulf %76, %80 : vector<8x128xf32>
    %cst_35 = arith.constant 0.000000e+00 : f32
    %82 = vector.broadcast %cst_35 : f32 to vector<8x128xf32>
    %83 = arith.maximumf %81, %82 : vector<8x128xf32>
    %84 = arith.truncf %83 : vector<8x128xf32> to vector<8x128xbf16>
    %c0_36 = arith.constant 0 : index
    %c0_37 = arith.constant 0 : index
    %85 = vector.load %arg7[%c0_36, %c0_37] : memref<128x128xbf16, #tpu.memory_space<vmem>>, vector<128x128xbf16>
    %cst_38 = arith.constant dense<0.000000e+00> : vector<8x128xf32>
    %86 = tpu.matmul %84, %85, %cst_38 {dimension_numbers = #tpu.dot_dimension_numbers<[1], [0], [0], [1], [0, 0, 1, 1], [], []>} : vector<8x128xbf16>, vector<128x128xbf16>, vector<8x128xf32> -> vector<8x128xf32>
    %c0_39 = arith.constant 0 : index
    %c0_40 = arith.constant 0 : index
    %87 = vector.load %arg8[%c0_39, %c0_40] : memref<1x128xf32, #tpu.memory_space<vmem>>, vector<1x128xf32>
    %88 = vector.broadcast %87 : vector<1x128xf32> to vector<8x128xf32>
    %89 = arith.addf %86, %88 : vector<8x128xf32>
    %c0_41 = arith.constant 0 : index
    %c0_42 = arith.constant 0 : index
    %90 = vector.load %arg9[%c0_41, %c0_42] : memref<8x128xf32, #tpu.memory_space<vmem>>, vector<8x128xf32>
    tpu.vector_store %arg9[%c0_41, %c0_42], %89 {strides = array<i32>} : memref<8x128xf32, #tpu.memory_space<vmem>>, vector<8x128xf32>,
    return
  }
}

</mosaic_0001>

<bundles_post_ra>
// kernel: multitask_forward.1
= control target key start
LH: loop header
LB: loop body
LE: loop exit
PB: predicated region body
PF: predicated region fallthrough
CT: control target
= control target key end

     0   :  { %14 = vsyncpa [#allocation3], 0  ;;  %s1950_s0 = inlined_call_operand.vmem [shape: bf16[8,128], index: 0, kind: input, shape index: {}]   ;;  %s1951_s1 = inlined_call_operand.hbm [shape: bf16[128,512], index: 1, kind: input, shape index: {}]   ;;  %s1952_s2 = inlined_call_operand.vmem [shape: f32[1,512], index: 2, kind: input, shape index: {}]   ;;  %s1953_s3 = inlined_call_operand.hbm [shape: bf16[512,256], index: 3, kind: input, shape index: {}]   ;;  %s1954_s4 = inlined_call_operand.vmem [shape: f32[1,256], index: 4, kind: input, shape index: {}]   ;;  %s1955_s5 = inlined_call_operand.hbm [shape: bf16[256,128], index: 5, kind: input, shape index: {}]   ;;  %s1956_s6 = inlined_call_operand.vmem [shape: f32[1,128], index: 6, kind: input, shape index: {}]   ;;  %s1957_s7 = inlined_call_operand.hbm [shape: bf16[128,128], index: 7, kind: input, shape index: {}]   ;;  %s1958_s8 = inlined_call_operand.vmem [shape: f32[1,128], index: 8, kind: input, shape index: {}]   ;;  %s1959_s9 = inlined_call_operand.vmem [shape: f32[8,128], index: 9, kind: output, shape index: {}]  }
   0x1   :  { %15 = vsyncpa [#allocation5], 0 }
   0x2   :  { %16 = vsyncpa [#allocation8], 0  ;;  %s1793_s30 = smov [#allocation4]   ;;  %s1699_s13 = scalar_lea.hbm %s1953_s3, 8192 }
   0x3   :  { %s38_s10 = sshll.u32 %s1793_s30, 4  ;;  %p1700_p0 = scmp.ne.s32.totalorder %s1953_s3, %s1699_s13  ;;  %s39_s10 = int_to_ptr.vmem [resolvable:$true] %s38_s10 }
   0x4   :  { %p1703_p1 = scmp.lt.u32.totalorder %s1699_s13, %s1953_s3 }
   0x6   :  { %p1705_p2 = pnand %p1703_p1, %p1700_p0 }
   0x8   :  { %1708 = shalt.err (!%p1705_p2)
}
   0x9   :  { %s1709_s18 = scalar_lea.vmem %s39_s10, 8192  ;;  %p1714_p4 = scmp.lt.s32.totalorder %s39_s10, %s39_s10 }
   0xa   :  { %p1710_p3 = scmp.ne.s32.totalorder %s39_s10, %s1709_s18  ;;  %p1715_p5 = scmp.lt.s32.totalorder %s1709_s18, %s1709_s18 }
   0xc   :  { %p1716_p6 = por %p1715_p5, %p1714_p4 }
   0xe   :  { %p1717_p7 = pnand %p1716_p6, %p1710_p3 }
  0x10   :  { %1720 = shalt.err (!%p1717_p7)
}
  0x11   :  { %s1794_s19 = smov 128   ;;  %s1795_s20 = smov 8  }
  0x12   :  { %44 = dma.hbm_to_vmem [thread:$0]  %s1953_s3, 8192, %s39_s10, [#allocation5], %s1794_s19, %s1794_s19, %s1795_s20  }
  0x13   :  { %s1796_s23 = smov [#allocation2]   ;;  %s1721_s27 = scalar_lea.hbm %s1951_s1, 4096 }
  0x14   :  { %s24_s24 = sshll.u32 %s1796_s23, 4  ;;  %p1722_p8 = scmp.ne.s32.totalorder %s1951_s1, %s1721_s27  ;;  %s25_s24 = int_to_ptr.vmem [resolvable:$true] %s24_s24 }
  0x15   :  { %p1725_p9 = scmp.lt.u32.totalorder %s1721_s27, %s1951_s1 }
  0x17   :  { %p1727_p10 = pnand %p1725_p9, %p1722_p8 }
  0x19   :  { %1730 = shalt.err (!%p1727_p10)
}
  0x1a   :  { %s1731_s12 = scalar_lea.vmem %s25_s24, 4096  ;;  %p1736_p12 = scmp.lt.s32.totalorder %s25_s24, %s25_s24 }
  0x1b   :  { %p1732_p11 = scmp.ne.s32.totalorder %s25_s24, %s1731_s12  ;;  %p1737_p13 = scmp.lt.s32.totalorder %s1731_s12, %s1731_s12 }
  0x1d   :  { %p1738_p0 = por %p1737_p13, %p1736_p12 }
  0x1f   :  { %p1739_p1 = pnand %p1738_p0, %p1732_p11 }
  0x21   :  { %1742 = shalt.err (!%p1739_p1)
}
  0x22   :  { %s1797_s3 = smov 256   ;;  %s1798_s10 = smov 16  }
  0x23   :  { %30 = dma.hbm_to_vmem [thread:$0]  %s1951_s1, 4096, %s25_s24, [#allocation3], %s1797_s3, %s1797_s3, %s1798_s10  }
  0x24   :  { %s1799_s15 = smov [#allocation6]   ;;  %s1743_s19 = scalar_lea.hbm %s1955_s5, 2048 }
  0x25   :  { %s52_s16 = sshll.u32 %s1799_s15, 4  ;;  %p1744_p2 = scmp.ne.s32.totalorder %s1955_s5, %s1743_s19  ;;  %s53_s16 = int_to_ptr.vmem [resolvable:$true] %s52_s16 }
  0x26   :  { %p1747_p3 = scmp.lt.u32.totalorder %s1743_s19, %s1955_s5 }
  0x28   :  { %p1749_p4 = pnand %p1747_p3, %p1744_p2 }
  0x2a   :  { %1752 = shalt.err (!%p1749_p4)
}
  0x2b   :  { %s1753_s25 = scalar_lea.vmem %s53_s16, 2048  ;;  %p1758_p6 = scmp.lt.s32.totalorder %s53_s16, %s53_s16 }
  0x2c   :  { %p1754_p5 = scmp.ne.s32.totalorder %s53_s16, %s1753_s25  ;;  %p1759_p7 = scmp.lt.s32.totalorder %s1753_s25, %s1753_s25 }
  0x2e   :  { %p1760_p8 = por %p1759_p7, %p1758_p6 }
  0x30   :  { %p1761_p9 = pnand %p1760_p8, %p1754_p5 }
  0x32   :  { %1764 = shalt.err (!%p1761_p9)
}
  0x33   :  { %s1800_s1 = smov 64   ;;  %s1801_s24 = smov 4  }
  0x34   :  { %58 = dma.hbm_to_vmem [thread:$0]  %s1955_s5, 2048, %s53_s16, [#allocation5], %s1800_s1, %s1800_s1, %s1801_s24  }
  0x35   :  { %s1802_s28 = smov [#allocation7]   ;;  %s1765_s12 = scalar_lea.hbm %s1957_s7, 1024 }
  0x36   :  { %s66_s29 = sshll.u32 %s1802_s28, 4  ;;  %p1766_p10 = scmp.ne.s32.totalorder %s1957_s7, %s1765_s12  ;;  %s67_s29 = int_to_ptr.vmem [resolvable:$true] %s66_s29 }
  0x37   :  { %p1769_p11 = scmp.lt.u32.totalorder %s1765_s12, %s1957_s7 }
  0x39   :  { %p1771_p12 = pnand %p1769_p11, %p1766_p10 }
  0x3b   :  { %1774 = shalt.err (!%p1771_p12)
}
  0x3c   :  { %s1775_s15 = scalar_lea.vmem %s67_s29, 1024  ;;  %p1780_p0 = scmp.lt.s32.totalorder %s67_s29, %s67_s29 }
  0x3d   :  { %p1776_p13 = scmp.ne.s32.totalorder %s67_s29, %s1775_s15  ;;  %p1781_p1 = scmp.lt.s32.totalorder %s1775_s15, %s1775_s15 }
  0x3f   :  { %p1782_p2 = por %p1781_p1, %p1780_p0 }
  0x41   :  { %p1783_p3 = pnand %p1782_p2, %p1776_p13 }
  0x43   :  { %1786 = shalt.err (!%p1783_p3)
}
  0x44   :  { %72 = dma.hbm_to_vmem [thread:$0]  %s1957_s7, 1024, %s67_s29, [#allocation8], %s1800_s1, %s1800_s1, %s1801_s24  }
  0x45   :  { %1787 = dma.done.wait [#allocation3], 4096  }
  0x46   :  { %1788 = vsyncadd [#allocation3], 4294963200 }
  0x47   :  { %1789 = dma.done.wait [#allocation5], 10240  }
  0x48   :  { %1790 = vsyncadd [#allocation5], 4294957056 }
  0x49   :  { %1791 = dma.done.wait [#allocation8], 1024  }
  0x4a   :  { %1792 = vsyncadd [#allocation8], 4294966272  ;;  %v1803_v0 = vmov 0   ;;  %v1517_v1 = vld [vmem:[#allocation2 + $0x4] ss:$16 sps:$4 sm:$0xff]   ;;  %vm1805_vm0 = vmmov 0  }
  0x4b   :  { %335 = vmatprep.mubr.bf16.mxu1 %v1803_v0  ;;  %v1519_v2 = vld [vmem:[#allocation2] ss:$16 sps:$4 sm:$0xff]   ;;  %303 = vmatprep.subr.bf16.mxu1 %v1517_v1  ;;  %v1520_v3 = vld [vmem:[#allocation2 + $0x24] ss:$16 sps:$4 sm:$0xff]   ;;  %v1543_v22 = vld [vmem:[#allocation2 + $0xc] ss:$16 sps:$4 sm:$0xff]  }
  0x4c   :  { %304 = vmatpush1.bf16.msra.mxu1 %v1519_v2  ;;  %v1522_v4 = vld [vmem:[#allocation2 + $0x20] ss:$16 sps:$4 sm:$0xff]   ;;  %v1523_v5 = vld [vmem:[#allocation2 + $0x44] ss:$16 sps:$4 sm:$0xff]   ;;  %v1541_v24 = vld [vmem:[#allocation2 + $0x8] ss:$16 sps:$4 sm:$0xff]  }
  0x4d   :  { %305 = vmatprep.subr.bf16.mxu1 %v1520_v3  ;;  %v1525_v6 = vld [vmem:[#allocation2 + $0x40] ss:$16 sps:$4 sm:$0xff]   ;;  %v1526_v7 = vld [vmem:[#allocation2 + $0x64] ss:$16 sps:$4 sm:$0xff]   ;;  %v1546_v27 = vld [vmem:[#allocation2 + $0x2c] ss:$16 sps:$4 sm:$0xff]   ;;  %v123_v3 = vlaneseq }
  0x4e   :  { %v1528_v8 = vld [vmem:[#allocation2 + $0x60] ss:$16 sps:$4 sm:$0xff]   ;;  %v1529_v9 = vld [vmem:[#allocation2 + $0x84] ss:$16 sps:$4 sm:$0xff]   ;;  %v1544_v30 = vld [vmem:[#allocation2 + $0x28] ss:$16 sps:$4 sm:$0xff]  }
  0x4f   :  { %v1531_v10 = vld [vmem:[#allocation2 + $0x80] ss:$16 sps:$4 sm:$0xff]   ;;  %v1532_v11 = vld [vmem:[#allocation2 + $0xa4] ss:$16 sps:$4 sm:$0xff]   ;;  %v1549_v31 = vld [vmem:[#allocation2 + $0x4c] ss:$16 sps:$4 sm:$0xff]  }
  0x50   :  { %306 = vmatpush1.bf16.msra.mxu1 %v1522_v4  ;;  %v1534_v12 = vld [vmem:[#allocation2 + $0xa0] ss:$16 sps:$4 sm:$0xff]   ;;  %v1535_v13 = vld [vmem:[#allocation2 + $0xc4] ss:$16 sps:$4 sm:$0xff]   ;;  %v1547_v34 = vld [vmem:[#allocation2 + $0x48] ss:$16 sps:$4 sm:$0xff]  }
  0x51   :  { %307 = vmatprep.subr.bf16.mxu1 %v1523_v5  ;;  %v1537_v14 = vld [vmem:[#allocation2 + $0xc0] ss:$16 sps:$4 sm:$0xff]   ;;  %v1565_v15 = vld [vmem:[#allocation4 + $0x4] ss:$8 sps:$4 sm:$0xff]   ;;  %v1568_v17 = vld [vmem:[#allocation4 + $0x14] ss:$8 sps:$4 sm:$0xff]  }
  0x52   :  { %v1567_v16 = vld [vmem:[#allocation4] ss:$8 sps:$4 sm:$0xff]   ;;  %v1538_v18 = vld [vmem:[#allocation2 + $0xe4] ss:$16 sps:$4 sm:$0xff]   ;;  %877 = vmatprep.subr.bf16.mxu0 %v1565_v15  ;;  %v1570_v19 = vld [vmem:[#allocation4 + $0x10] ss:$8 sps:$4 sm:$0xff]  }
  0x53   :  { %878 = vmatpush1.bf16.msra.mxu0 %v1567_v16  ;;  %v1571_v20 = vld [vmem:[#allocation4 + $0x24] ss:$8 sps:$4 sm:$0xff]   ;;  %v1540_v21 = vld [vmem:[#allocation2 + $0xe0] ss:$16 sps:$4 sm:$0xff]   ;;  %v1574_v26 = vld [vmem:[#allocation4 + $0x34] ss:$8 sps:$4 sm:$0xff]  }
  0x54   :  { %308 = vmatpush1.bf16.msra.mxu1 %v1525_v6  ;;  %879 = vmatprep.subr.bf16.mxu0 %v1568_v17  ;;  %v88_v23 = vld [vmem:[%s1950_s0] sm:$0xf]  ;;  %v1576_v28 = vld [vmem:[#allocation4 + $0x30] ss:$8 sps:$4 sm:$0xff]   ;;  %v1577_v29 = vld [vmem:[#allocation4 + $0x44] ss:$8 sps:$4 sm:$0xff]  }
  0x55   :  { %309 = vmatprep.subr.bf16.mxu1 %v1526_v7  ;;  %v1573_v25 = vld [vmem:[#allocation4 + $0x20] ss:$8 sps:$4 sm:$0xff]   ;;  %v1580_v33 = vld [vmem:[#allocation4 + $0x54] ss:$8 sps:$4 sm:$0xff]   ;;  %v1582_v45 = vld [vmem:[#allocation4 + $0x50] ss:$8 sps:$4 sm:$0xff]  }
  0x56   :  { %v1579_v32 = vld [vmem:[#allocation4 + $0x40] ss:$8 sps:$4 sm:$0xff]   ;;  %v1552_v35 = vld [vmem:[#allocation2 + $0x6c] ss:$16 sps:$4 sm:$0xff]   ;;  %v1588_v49 = vld [vmem:[#allocation4 + $0x70] ss:$8 sps:$4 sm:$0xff]  }
  0x57   :  { %880 = vmatpush1.bf16.msra.mxu0 %v1570_v19  ;;  %v1550_v36 = vld [vmem:[#allocation2 + $0x68] ss:$16 sps:$4 sm:$0xff]   ;;  %v1555_v37 = vld [vmem:[#allocation2 + $0x8c] ss:$16 sps:$4 sm:$0xff]   ;;  %v1907_v4 = vshrl.u32 %v123_v3, 7 }
  0x58   :  { %310 = vmatpush1.bf16.msra.mxu1 %v1528_v8  ;;  %881 = vmatprep.subr.bf16.mxu0 %v1571_v20  ;;  %v1553_v38 = vld [vmem:[#allocation2 + $0x88] ss:$16 sps:$4 sm:$0xff]   ;;  %v1558_v39 = vld [vmem:[#allocation2 + $0xac] ss:$16 sps:$4 sm:$0xff]   ;;  %v121_v6 = vld [vmem:[%s1952_s2] sm:$0xf] }
  0x59   :  { %311 = vmatprep.subr.bf16.mxu1 %v1529_v9  ;;  %v1556_v40 = vld [vmem:[#allocation2 + $0xa8] ss:$16 sps:$4 sm:$0xff]   ;;  %v1561_v41 = vld [vmem:[#allocation2 + $0xcc] ss:$16 sps:$4 sm:$0xff]   ;;  %v125_v5 = vsub.s32 0, %v1907_v4  ;;  %v129_v7 = vsub.s32 1, %v1907_v4 }
  0x5a   :  { %v1559_v42 = vld [vmem:[#allocation2 + $0xc8] ss:$16 sps:$4 sm:$0xff]   ;;  %v1564_v43 = vld [vmem:[#allocation2 + $0xec] ss:$16 sps:$4 sm:$0xff]  }
  0x5b   :  { %882 = vmatpush1.bf16.msra.mxu0 %v1573_v25  ;;  %v1562_v44 = vld [vmem:[#allocation2 + $0xe8] ss:$16 sps:$4 sm:$0xff]   ;;  %v1583_v46 = vld [vmem:[#allocation4 + $0x64] ss:$8 sps:$4 sm:$0xff]   ;;  %v1586_v48 = vld [vmem:[#allocation4 + $0x74] ss:$8 sps:$4 sm:$0xff]   ;;  %v126_v8 = vrot.slane %v121_v6, %v125_v5  ;;  %v130_v9 = vrot.slane %v121_v6, %v129_v7 }
  0x5c   :  { %312 = vmatpush1.bf16.msra.mxu1 %v1531_v10  ;;  %883 = vmatprep.subr.bf16.mxu0 %v1574_v26  ;;  %v1585_v47 = vld [vmem:[#allocation4 + $0x60] ss:$8 sps:$4 sm:$0xff]   ;;  %v1589_v50 = vld [vmem:[#allocation4 + $0x84] ss:$8 sps:$4 sm:$0xff]   ;;  %v1592_v52 = vld [vmem:[#allocation4 + $0x94] ss:$8 sps:$4 sm:$0xff]  }
  0x5d   :  { %313 = vmatprep.subr.bf16.mxu1 %v1532_v11  ;;  %v1591_v51 = vld [vmem:[#allocation4 + $0x80] ss:$8 sps:$4 sm:$0xff]   ;;  %v1594_v53 = vld [vmem:[#allocation4 + $0x90] ss:$8 sps:$4 sm:$0xff]   ;;  %v1595_v54 = vld [vmem:[#allocation4 + $0xa4] ss:$8 sps:$4 sm:$0xff]  }
  0x5e   :  { %v1597_v55 = vld [vmem:[#allocation4 + $0xa0] ss:$8 sps:$4 sm:$0xff]   ;;  %v1598_v56 = vld [vmem:[#allocation4 + $0xb4] ss:$8 sps:$4 sm:$0xff]   ;;  %v1600_v57 = vld [vmem:[#allocation4 + $0xb0] ss:$8 sps:$4 sm:$0xff]  }
  0x5f   :  { %884 = vmatpush1.bf16.msra.mxu0 %v1576_v28  ;;  %v1601_v58 = vld [vmem:[#allocation4 + $0xc4] ss:$8 sps:$4 sm:$0xff]   ;;  %v1603_v59 = vld [vmem:[#allocation4 + $0xc0] ss:$8 sps:$4 sm:$0xff]   ;;  %v1604_v60 = vld [vmem:[#allocation4 + $0xd4] ss:$8 sps:$4 sm:$0xff]  }
  0x60   :  { %314 = vmatpush1.bf16.msra.mxu1 %v1534_v12  ;;  %885 = vmatprep.subr.bf16.mxu0 %v1577_v29  ;;  %v1606_v61 = vld [vmem:[#allocation4 + $0xd0] ss:$8 sps:$4 sm:$0xff]   ;;  %v1607_v62 = vld [vmem:[#allocation4 + $0xe4] ss:$8 sps:$4 sm:$0xff]   ;;  %v1609_v63 = vld [vmem:[#allocation4 + $0xe0] ss:$8 sps:$4 sm:$0xff]  }
  0x61   :  { %315 = vmatprep.subr.bf16.mxu1 %v1535_v13  ;;  %v1612_v1 = vld [vmem:[#allocation4 + $0xf0] ss:$8 sps:$4 sm:$0xff]   ;;  %v1615_v2 = vld [vmem:[#allocation4 + $0x104] ss:$8 sps:$4 sm:$0xff]  }
  0x63   :  { %886 = vmatpush1.bf16.msra.mxu0 %v1579_v32 }
  0x64   :  { %316 = vmatpush1.bf16.msra.mxu1 %v1537_v14  ;;  %887 = vmatprep.subr.bf16.mxu0 %v1580_v33 }
  0x65   :  { %317 = vmatprep.subr.bf16.mxu1 %v1538_v18 }
  0x67   :  { %888 = vmatpush1.bf16.msra.mxu0 %v1582_v45 }
  0x68   :  { %318 = vmatpush1.bf16.msra.mxu1 %v1540_v21  ;;  %889 = vmatprep.subr.bf16.mxu0 %v1583_v46 }
  0x69   :  { %344 = vmatprep.subr.bf16.mxu1 %v1543_v22 }
  0x6b   :  { %336 = vmatmul.mubr.bf16.vlgmr.msra.gmra.mrb[0].mxu1 %v88_v23  ;;  %890 = vmatpush1.bf16.msra.mxu0 %v1585_v47 }
  0x6c   :  { %345 = vmatpush1.bf16.msra.mxu1 %v1541_v24  ;;  %376 = vmatprep.mubr.bf16.mxu1 %v1803_v0  ;;  %v1610_v0 = vld [vmem:[#allocation4 + $0xf4] ss:$8 sps:$4 sm:$0xff]  }
  0x6d   :  { %346 = vmatprep.subr.bf16.mxu1 %v1546_v27  ;;  %891 = vmatprep.subr.bf16.mxu0 %v1586_v48 }
  0x6f   :  { %892 = vmatpush1.bf16.msra.mxu0 %v1588_v49 }
  0x70   :  { %347 = vmatpush1.bf16.msra.mxu1 %v1544_v30  ;;  %893 = vmatprep.subr.bf16.mxu0 %v1589_v50 }
  0x71   :  { %348 = vmatprep.subr.bf16.mxu1 %v1549_v31 }
  0x73   :  { %894 = vmatpush1.bf16.msra.mxu0 %v1591_v51 }
  0x74   :  { %349 = vmatpush1.bf16.msra.mxu1 %v1547_v34  ;;  %895 = vmatprep.subr.bf16.mxu0 %v1592_v52 }
  0x75   :  { %350 = vmatprep.subr.bf16.mxu1 %v1552_v35 }
  0x77   :  { %896 = vmatpush1.bf16.msra.mxu0 %v1594_v53 }
  0x78   :  { %351 = vmatpush1.bf16.msra.mxu1 %v1550_v36  ;;  %897 = vmatprep.subr.bf16.mxu0 %v1595_v54  ;;  %v137_v54 = vsub.s32 3, %v1907_v4 }
  0x79   :  { %352 = vmatprep.subr.bf16.mxu1 %v1555_v37 }
  0x7b   :  { %898 = vmatpush1.bf16.msra.mxu0 %v1597_v55  ;;  %v133_v55 = vsub.s32 2, %v1907_v4 }
  0x7c   :  { %353 = vmatpush1.bf16.msra.mxu1 %v1553_v38  ;;  %899 = vmatprep.subr.bf16.mxu0 %v1598_v56  ;;  %v138_v56 = vrot.slane %v121_v6, %v137_v54  ;;  %v1628_v54 = vld [vmem:[#allocation4 + $0x150] ss:$8 sps:$4 sm:$0xff]  }
  0x7d   :  { %354 = vmatprep.subr.bf16.mxu1 %v1558_v39 }
  0x7f   :  { %900 = vmatpush1.bf16.msra.mxu0 %v1600_v57 }
  0x80   :  { %355 = vmatpush1.bf16.msra.mxu1 %v1556_v40  ;;  %901 = vmatprep.subr.bf16.mxu0 %v1601_v58  ;;  %v134_v58 = vrot.slane %v121_v6, %v133_v55  ;;  %v1633_v55 = vld [vmem:[#allocation4 + $0x164] ss:$8 sps:$4 sm:$0xff]  }
  0x81   :  { %356 = vmatprep.subr.bf16.mxu1 %v1561_v41 }
  0x83   :  { %902 = vmatpush1.bf16.msra.mxu0 %v1603_v59 }
  0x84   :  { %357 = vmatpush1.bf16.msra.mxu1 %v1559_v42  ;;  %903 = vmatprep.subr.bf16.mxu0 %v1604_v60 }
  0x85   :  { %358 = vmatprep.subr.bf16.mxu1 %v1564_v43 }
  0x87   :  { %904 = vmatpush1.bf16.msra.mxu0 %v1606_v61 }
  0x88   :  { %359 = vmatpush1.bf16.msra.mxu1 %v1562_v44  ;;  %905 = vmatprep.subr.bf16.mxu0 %v1607_v62 }
  0x8b   :  { %377 = vmatmul.mubr.bf16.vlgmr.msra.gmra.mrb[4].mxu1 %v88_v23  ;;  %906 = vmatpush1.bf16.msra.mxu0 %v1609_v63 }
  0x8c   :  { %907 = vmatprep.subr.bf16.mxu0 %v1610_v0 }
  0x8f   :  { %908 = vmatpush1.bf16.msra.mxu0 %v1612_v1 }
  0x90   :  { %918 = vmatprep.subr.bf16.mxu0 %v1615_v2 }
 0x13e   :  { %v337_v10 = vpop.f32.mrb[0].mxu1 }
 0x13f   :  { %v338_v11 = vadd.f32 %v337_v10, %v126_v8  ;;  %v339_v12 = vpop.f32.mrb[1].mxu1 }
 0x140   :  { %v340_v13 = vadd.f32 %v339_v12, %v130_v9  ;;  %v341_v14 = vpop.f32.mrb[2].mxu1 }
 0x141   :  { %v385_v15 = vrot.slane %v338_v11, 4  ;;  %v409_v16 = vmul.f32 %v338_v11, %v338_v11  ;;  %v342_v17 = vpop.f32.mrb[3].mxu1 }
 0x142   :  { %v391_v18 = vrot.slane %v340_v13, 4  ;;  %v410_v19 = vmul.f32 %v340_v13, %v340_v13 }
 0x143   :  { %v386_v20 = vadd.f32 %v385_v15, %v338_v11  ;;  %v413_v21 = vrot.slane %v409_v16, 4 }
 0x144   :  { %v392_v22 = vadd.f32 %v391_v18, %v340_v13  ;;  %v419_v23 = vrot.slane %v410_v19, 4 }
 0x145   :  { %v387_v24 = vrot.slane %v386_v20, 2  ;;  %v414_v25 = vadd.f32 %v413_v21, %v409_v16 }
 0x146   :  { %v420_v26 = vadd.f32 %v419_v23, %v410_v19  ;;  %v393_v27 = vrot.slane %v392_v22, 2 }
 0x147   :  { %v388_v28 = vadd.f32 %v387_v24, %v386_v20  ;;  %v415_v29 = vrot.slane %v414_v25, 2  ;;  %v1613_v20 = vld [vmem:[#allocation4 + $0x100] ss:$8 sps:$4 sm:$0xff]   ;;  %v1618_v24 = vld [vmem:[#allocation4 + $0x114] ss:$8 sps:$4 sm:$0xff]  }
 0x148   :  { %v421_v30 = vrot.slane %v420_v26, 2  ;;  %v394_v31 = vadd.f32 %v393_v27, %v392_v22 }
 0x149   :  { %v416_v32 = vadd.f32 %v415_v29, %v414_v25  ;;  %v389_v33 = vrot.slane %v388_v28, 1  ;;  %v1616_v29 = vld [vmem:[#allocation4 + $0x110] ss:$8 sps:$4 sm:$0xff]  }
 0x14a   :  { %v422_v34 = vadd.f32 %v421_v30, %v420_v26  ;;  %v395_v35 = vrot.slane %v394_v31, 1 }
 0x14b   :  { %v417_v36 = vrot.slane %v416_v32, 1  ;;  %v390_v37 = vadd.f32 %v389_v33, %v388_v28 }
 0x14c   :  { %v396_v38 = vadd.f32 %v395_v35, %v394_v31  ;;  %v423_v39 = vrot.slane %v422_v34, 1  ;;  %v1621_v31 = vld [vmem:[#allocation4 + $0x124] ss:$8 sps:$4 sm:$0xff]  }
 0x14d   :  { %v418_v40 = vadd.f32 %v417_v36, %v416_v32  ;;  %v437_v41 = vmul.f32 0.125, %v390_v37  ;;  %v1619_v37 = vld [vmem:[#allocation4 + $0x120] ss:$8 sps:$4 sm:$0xff]  }
 0x14e   :  { %v424_v42 = vadd.f32 %v423_v39, %v422_v34  ;;  %v438_v43 = vmul.f32 0.125, %v396_v38  ;;  %v1624_v38 = vld [vmem:[#allocation4 + $0x134] ss:$8 sps:$4 sm:$0xff]  }
 0x14f   :  { %v441_v44 = vmul.f32 0.125, %v418_v40  ;;  %v445_v45 = vmul.f32 %v437_v41, %v437_v41  ;;  %v457_v61 = vsub.f32 %v338_v11, %v437_v41 }
 0x150   :  { %v442_v46 = vmul.f32 0.125, %v424_v42  ;;  %v446_v47 = vmul.f32 %v438_v43, %v438_v43  ;;  %v458_v0 = vsub.f32 %v340_v13, %v438_v43 }
 0x151   :  { %v449_v48 = vsub.f32 %v441_v44, %v445_v45  ;;  %v1622_v44 = vld [vmem:[#allocation4 + $0x130] ss:$8 sps:$4 sm:$0xff]   ;;  %v1627_v45 = vld [vmem:[#allocation4 + $0x144] ss:$8 sps:$4 sm:$0xff]  }
 0x152   :  { %v450_v49 = vsub.f32 %v442_v46, %v446_v47 }
 0x153   :  { %v453_v50 = vmax.f32 %v449_v48, 0.0 }
 0x154   :  { %v454_v51 = vmax.f32 %v450_v49, 0.0 }
 0x155   :  { %v461_v52 = vadd.f32 1e-05, %v453_v50  ;;  %v1625_v50 = vld [vmem:[#allocation4 + $0x140] ss:$8 sps:$4 sm:$0xff]  }
 0x156   :  { %v462_v53 = vadd.f32 1e-05, %v454_v51  ;;  %v1630_v51 = vld [vmem:[#allocation4 + $0x154] ss:$8 sps:$4 sm:$0xff]  }
 0x157   :  { %1685 = vrsqrt.f32 %v461_v52 }
 0x158   :  { %1687 = vrsqrt.f32 %v462_v53 }
 0x15e   :  { %v378_v57 = vpop.f32.mrb[4].mxu1 }
 0x15f   :  { %v380_v59 = vpop.f32.mrb[5].mxu1  ;;  %v1925_v10 = vadd.f32 %v378_v57, %v134_v58  ;;  %v1631_v58 = vld [vmem:[#allocation4 + $0x160] ss:$8 sps:$4 sm:$0xff]  }
 0x160   :  { %v1920_v60 = vadd.f32 %v380_v59, %v138_v56  ;;  %v382_v62 = vpop.f32.mrb[6].mxu1 }
 0x161   :  { %v1686_v63 = vpop.eup %1685  ;;  %v383_v1 = vpop.f32.mrb[7].mxu1  ;;  %v397_v13 = vrot.slane %v1925_v10, 4  ;;  %v411_v18 = vmul.f32 %v1925_v10, %v1925_v10 }
 0x162   :  { %v1688_v2 = vpop.eup %1687  ;;  %v403_v3 = vrot.slane %v1920_v60, 4  ;;  %v412_v8 = vmul.f32 %v1920_v60, %v1920_v60  ;;  %v469_v9 = vmul.f32 %v1686_v63, %v457_v61  ;;  %v1636_v61 = vld [vmem:[#allocation4 + $0x174] ss:$8 sps:$4 sm:$0xff]   ;;  %v1634_v1 = vld [vmem:[#allocation4 + $0x170] ss:$8 sps:$4 sm:$0xff]  }
 0x163   :  { %v470_v12 = vmul.f32 %v1688_v2, %v458_v0  ;;  %v398_v27 = vadd.f32 %v397_v13, %v1925_v10  ;;  %v425_v28 = vrot.slane %v411_v18, 4  ;;  %v1648_v13 = vld [vmem:[#allocation4 + $0x1b4] ss:$8 sps:$4 sm:$0xff]  }
 0x164   :  { %v404_v6 = vadd.f32 %v403_v3, %v1920_v60  ;;  %v431_v14 = vrot.slane %v412_v8, 4  ;;  %v473_v15 = vmax.f32 %v469_v9, 0.0  ;;  %v1639_v3 = vld [vmem:[#allocation4 + $0x184] ss:$8 sps:$4 sm:$0xff]  }
 0x165   :  { %v474_v16 = vmax.f32 %v470_v12, 0.0  ;;  %v399_v35 = vrot.slane %v398_v27, 2  ;;  %v426_v36 = vadd.f32 %v425_v28, %v411_v18  ;;  %v1637_v12 = vld [vmem:[#allocation4 + $0x180] ss:$8 sps:$4 sm:$0xff]   ;;  %v1646_v18 = vld [vmem:[#allocation4 + $0x1b0] ss:$8 sps:$4 sm:$0xff]  }
 0x166   :  { %v405_v11 = vrot.slane %v404_v6, 2  ;;  %v432_v17 = vadd.f32 %v431_v14, %v412_v8  ;;  %v477_v23 = vpack.c.bf16 %v473_v15, %v473_v15  ;;  %v1642_v14 = vld [vmem:[#allocation4 + $0x194] ss:$8 sps:$4 sm:$0xff]  }
 0x167   :  { %v478_v19 = vpack.c.bf16 %v474_v16, %v474_v16  ;;  %v400_v42 = vadd.f32 %v399_v35, %v398_v27  ;;  %v427_v43 = vrot.slane %v426_v36, 2  ;;  %v1645_v16 = vld [vmem:[#allocation4 + $0x1a4] ss:$8 sps:$4 sm:$0xff]   ;;  %v1660_v27 = vld [vmem:[#allocation4 + $0x1f4] ss:$8 sps:$4 sm:$0xff]  }
 0x168   :  { %v406_v21 = vadd.f32 %v405_v11, %v404_v6  ;;  %v433_v22 = vrot.slane %v432_v17, 2  ;;  %v1665_v35 = vld [vmem:[#allocation6 + $0x50] sm:$0xff]  }
 0x169   :  { %909 = vmatprep.mubr.bf16.mxu0 %v478_v19  ;;  %v401_v48 = vrot.slane %v400_v42, 1  ;;  %v428_v49 = vadd.f32 %v427_v43, %v426_v36  ;;  %v1651_v19 = vld [vmem:[#allocation4 + $0x1c4] ss:$8 sps:$4 sm:$0xff]   ;;  %v1666_v36 = vld [vmem:[#allocation6 + $0x10] sm:$0xff]  }
 0x16a   :  { %v434_v25 = vadd.f32 %v433_v22, %v432_v17  ;;  %910 = vmatmul.mubr.bf16.vlgmr.msra.gmra.mrb[0].mxu0 %v477_v23  ;;  %v407_v26 = vrot.slane %v406_v21, 1  ;;  %v1643_v17 = vld [vmem:[#allocation4 + $0x1a0] ss:$8 sps:$4 sm:$0xff]   ;;  %v1652_v22 = vld [vmem:[#allocation4 + $0x1d0] ss:$8 sps:$4 sm:$0xff]  }
 0x16b   :  { %919 = vmatpush1.bf16.msra.mxu0 %v1613_v20  ;;  %v402_v52 = vadd.f32 %v401_v48, %v400_v42  ;;  %v429_v53 = vrot.slane %v428_v49, 1  ;;  %v1649_v20 = vld [vmem:[#allocation4 + $0x1c0] ss:$8 sps:$4 sm:$0xff]   ;;  %v1673_v43 = vld [vmem:[#allocation6 + $0x70] sm:$0xff]  }
 0x16c   :  { %v435_v30 = vrot.slane %v434_v25, 1  ;;  %920 = vmatprep.subr.bf16.mxu0 %v1618_v24  ;;  %v408_v32 = vadd.f32 %v407_v26, %v406_v21  ;;  %v1654_v21 = vld [vmem:[#allocation4 + $0x1d4] ss:$8 sps:$4 sm:$0xff]   ;;  %v1657_v24 = vld [vmem:[#allocation4 + $0x1e4] ss:$8 sps:$4 sm:$0xff]  }
 0x16d   :  { %v430_v56 = vadd.f32 %v429_v53, %v428_v49  ;;  %v439_v57 = vmul.f32 0.125, %v402_v52  ;;  %v1655_v26 = vld [vmem:[#allocation4 + $0x1e0] ss:$8 sps:$4 sm:$0xff]  }
 0x16e   :  { %v436_v33 = vadd.f32 %v435_v30, %v434_v25  ;;  %v440_v34 = vmul.f32 0.125, %v408_v32  ;;  %v1661_v32 = vld [vmem:[#allocation6 + $0x40] sm:$0xff]   ;;  %v1672_v42 = vld [vmem:[#allocation6 + $0x28] sm:$0xff]  }
 0x16f   :  { %921 = vmatpush1.bf16.msra.mxu0 %v1616_v29  ;;  %v443_v63 = vmul.f32 0.125, %v430_v56  ;;  %v447_v0 = vmul.f32 %v439_v57, %v439_v57  ;;  %v459_v23 = vsub.f32 %v1925_v10, %v439_v57  ;;  %v1658_v29 = vld [vmem:[#allocation4 + $0x1f0] ss:$8 sps:$4 sm:$0xff]   ;;  %1447 = vmatprep.subr.bf16.mxu1 %v1661_v32  ;;  %v1663_v10 = vld [vmem:[#allocation6 + $0x48] sm:$0xff]  }
 0x170   :  { %922 = vmatprep.subr.bf16.mxu0 %v1621_v31  ;;  %v444_v39 = vmul.f32 0.125, %v436_v33  ;;  %v448_v40 = vmul.f32 %v440_v34, %v440_v34  ;;  %v460_v59 = vsub.f32 %v1920_v60, %v440_v34  ;;  %v1640_v60 = vld [vmem:[#allocation4 + $0x190] ss:$8 sps:$4 sm:$0xff]   ;;  %v1662_v33 = vld [vmem:[#allocation6] sm:$0xff]   ;;  %v1664_v34 = vld [vmem:[#allocation6 + $0x8] sm:$0xff]  }
 0x171   :  { %v451_v9 = vsub.f32 %v443_v63, %v447_v0  ;;  %1448 = vmatpush3.bf16.msra.mxu1 %v1662_v33 }
 0x172   :  { %v452_v41 = vsub.f32 %v444_v39, %v448_v40  ;;  %1449 = vmatprep.subr.bf16.mxu1 %v1663_v10  ;;  %v1669_v39 = vld [vmem:[#allocation6 + $0x60] sm:$0xff]  }
 0x173   :  { %923 = vmatpush1.bf16.msra.mxu0 %v1619_v37  ;;  %v455_v15 = vmax.f32 %v451_v9, 0.0  ;;  %v1667_v37 = vld [vmem:[#allocation6 + $0x58] sm:$0xff]   ;;  %v1670_v40 = vld [vmem:[#allocation6 + $0x20] sm:$0xff]  }
 0x174   :  { %924 = vmatprep.subr.bf16.mxu0 %v1624_v38  ;;  %v456_v46 = vmax.f32 %v452_v41, 0.0  ;;  %v1668_v38 = vld [vmem:[#allocation6 + $0x18] sm:$0xff]   ;;  %v1671_v41 = vld [vmem:[#allocation6 + $0x68] sm:$0xff]  }
 0x175   :  { %v463_v11 = vadd.f32 1e-05, %v455_v15  ;;  %1450 = vmatpush3.bf16.msra.mxu1 %v1664_v34 }
 0x176   :  { %v464_v47 = vadd.f32 1e-05, %v456_v46  ;;  %1451 = vmatprep.subr.bf16.mxu1 %v1665_v35  ;;  %v1676_v46 = vld [vmem:[#allocation6 + $0x38] sm:$0xff]  }
 0x177   :  { %925 = vmatpush1.bf16.msra.mxu0 %v1622_v44  ;;  %v1674_v44 = vld [vmem:[#allocation6 + $0x30] sm:$0xff]  }
 0x178   :  { %926 = vmatprep.subr.bf16.mxu0 %v1627_v45  ;;  %1689 = vrsqrt.f32 %v464_v47  ;;  %v1675_v45 = vld [vmem:[#allocation6 + $0x78] sm:$0xff]   ;;  %v545_v47 = vld [vmem:[%s1954_s4] sm:$0x3] }
 0x179   :  { %1691 = vrsqrt.f32 %v463_v11  ;;  %1452 = vmatpush3.bf16.msra.mxu1 %v1666_v36  ;;  %v550_v48 = vrot.slane %v545_v47, %v125_v5  ;;  %v554_v49 = vrot.slane %v545_v47, %v129_v7  ;;  %v1683_v47 = vld [vmem:[#allocation7 + $0x30] sm:$0xff]  }
 0x17a   :  { %1453 = vmatprep.subr.bf16.mxu1 %v1667_v37 }
 0x17b   :  { %927 = vmatpush1.bf16.msra.mxu0 %v1625_v50 }
 0x17c   :  { %928 = vmatprep.subr.bf16.mxu0 %v1630_v51 }
 0x17d   :  { %1454 = vmatpush3.bf16.msra.mxu1 %v1668_v38 }
 0x17e   :  { %1455 = vmatprep.subr.bf16.mxu1 %v1669_v39 }
 0x17f   :  { %929 = vmatpush1.bf16.msra.mxu0 %v1628_v54 }
 0x180   :  { %930 = vmatprep.subr.bf16.mxu0 %v1633_v55 }
 0x181   :  { %1456 = vmatpush3.bf16.msra.mxu1 %v1670_v40  ;;  %v1677_v40 = vld [vmem:[#allocation7] sm:$0xff]  }
 0x182   :  { %v1690_v62 = vpop.eup %1689  ;;  %1457 = vmatprep.subr.bf16.mxu1 %v1671_v41  ;;  %v1804_v41 = vmov 0.0  }
 0x183   :  { %931 = vmatpush1.bf16.msra.mxu0 %v1631_v58  ;;  %v472_v2 = vmul.f32 %v1690_v62, %v460_v59  ;;  %v1692_v25 = vpop.eup %1691 }
 0x184   :  { %932 = vmatprep.subr.bf16.mxu0 %v1636_v61  ;;  %v471_v28 = vmul.f32 %v1692_v25, %v459_v23 }
 0x185   :  { %v476_v8 = vmax.f32 %v472_v2, 0.0  ;;  %1458 = vmatpush3.bf16.msra.mxu1 %v1672_v42  ;;  %v1678_v42 = vld [vmem:[#allocation7 + $0x8] sm:$0xff]  }
 0x186   :  { %v475_v30 = vmax.f32 %v471_v28, 0.0  ;;  %1459 = vmatprep.subr.bf16.mxu1 %v1673_v43  ;;  %v1679_v43 = vld [vmem:[#allocation7 + $0x10] sm:$0xff]  }
 0x187   :  { %933 = vmatpush1.bf16.msra.mxu0 %v1634_v1  ;;  %v480_v6 = vpack.c.bf16 %v476_v8, %v476_v8 }
 0x188   :  { %934 = vmatprep.subr.bf16.mxu0 %v1639_v3  ;;  %v479_v31 = vpack.c.bf16 %v475_v30, %v475_v30 }
 0x189   :  { %950 = vmatprep.mubr.bf16.mxu0 %v480_v6  ;;  %1460 = vmatpush3.bf16.msra.mxu1 %v1674_v44  ;;  %v1680_v44 = vld [vmem:[#allocation7 + $0x18] sm:$0xff]  }
 0x18a   :  { %1461 = vmatprep.subr.bf16.mxu1 %v1675_v45  ;;  %v1681_v45 = vld [vmem:[#allocation7 + $0x20] sm:$0xff]  }
 0x18b   :  { %935 = vmatpush1.bf16.msra.mxu0 %v1637_v12 }
 0x18c   :  { %936 = vmatprep.subr.bf16.mxu0 %v1642_v14 }
 0x18d   :  { %1462 = vmatpush3.bf16.msra.mxu1 %v1676_v46  ;;  %v1682_v46 = vld [vmem:[#allocation7 + $0x28] sm:$0xff]  }
 0x18e   :  { %1478 = vmatprep.subr.bf16.mxu1 %v1804_v41 }
 0x18f   :  { %937 = vmatpush1.bf16.msra.mxu0 %v1640_v60 }
 0x190   :  { %938 = vmatprep.subr.bf16.mxu0 %v1645_v16 }
 0x193   :  { %939 = vmatpush1.bf16.msra.mxu0 %v1643_v17 }
 0x194   :  { %940 = vmatprep.subr.bf16.mxu0 %v1648_v13 }
 0x197   :  { %941 = vmatpush1.bf16.msra.mxu0 %v1646_v18 }
 0x198   :  { %942 = vmatprep.subr.bf16.mxu0 %v1651_v19 }
 0x19b   :  { %943 = vmatpush1.bf16.msra.mxu0 %v1649_v20 }
 0x19c   :  { %944 = vmatprep.subr.bf16.mxu0 %v1654_v21 }
 0x19f   :  { %945 = vmatpush1.bf16.msra.mxu0 %v1652_v22 }
 0x1a0   :  { %946 = vmatprep.subr.bf16.mxu0 %v1657_v24 }
 0x1a3   :  { %947 = vmatpush1.bf16.msra.mxu0 %v1655_v26 }
 0x1a4   :  { %948 = vmatprep.subr.bf16.mxu0 %v1660_v27 }
 0x1a7   :  { %949 = vmatpush1.bf16.msra.mxu0 %v1658_v29 }
 0x1aa   :  { %951 = vmatmul.mubr.bf16.vlgmr.msra.gmra.mrb[0].mxu0 %v479_v31 }
 0x27d   :  { %v952_v50 = vpop.f32.mrb[0].mxu0 }
 0x27e   :  { %v1498_v51 = vadd.f32 %v952_v50, %v550_v48  ;;  %v954_v52 = vpop.f32.mrb[1].mxu0  ;;  %v1684_v48 = vld [vmem:[#allocation7 + $0x38] sm:$0xff]   ;;  %v1421_v50 = vld [vmem:[%s1956_s6] ss:$0 sm:$0xff] }
 0x27f   :  { %v1499_v53 = vadd.f32 %v954_v52, %v554_v49  ;;  %v956_v54 = vpop.f32.mrb[2].mxu0 }
 0x280   :  { %v959_v55 = vrot.slane %v1498_v51, 4  ;;  %v971_v56 = vmul.f32 %v1498_v51, %v1498_v51  ;;  %v957_v57 = vpop.f32.mrb[3].mxu0 }
 0x281   :  { %v965_v58 = vrot.slane %v1499_v53, 4  ;;  %v972_v59 = vmul.f32 %v1499_v53, %v1499_v53 }
 0x282   :  { %v960_v61 = vadd.f32 %v1498_v51, %v959_v55  ;;  %v973_v62 = vrot.slane %v971_v56, 4 }
 0x283   :  { %v966_v63 = vadd.f32 %v1499_v53, %v965_v58  ;;  %v979_v0 = vrot.slane %v972_v59, 4 }
 0x284   :  { %v961_v1 = vrot.slane %v960_v61, 2  ;;  %v974_v2 = vadd.f32 %v973_v62, %v971_v56 }
 0x285   :  { %v967_v5 = vrot.slane %v966_v63, 2  ;;  %v980_v3 = vadd.f32 %v979_v0, %v972_v59 }
 0x286   :  { %v962_v4 = vadd.f32 %v961_v1, %v960_v61  ;;  %v975_v7 = vrot.slane %v974_v2, 2 }
 0x287   :  { %v968_v8 = vadd.f32 %v967_v5, %v966_v63  ;;  %v981_v9 = vrot.slane %v980_v3, 2 }
 0x288   :  { %v963_v12 = vrot.slane %v962_v4, 1  ;;  %v976_v6 = vadd.f32 %v975_v7, %v974_v2 }
 0x289   :  { %v982_v14 = vadd.f32 %v981_v9, %v980_v3  ;;  %v969_v15 = vrot.slane %v968_v8, 1 }
 0x28a   :  { %v964_v60 = vadd.f32 %v963_v12, %v962_v4  ;;  %v977_v16 = vrot.slane %v976_v6, 1 }
 0x28b   :  { %v983_v11 = vrot.slane %v982_v14, 1  ;;  %v970_v17 = vadd.f32 %v969_v15, %v968_v8 }
 0x28c   :  { %v978_v13 = vadd.f32 %v977_v16, %v976_v6  ;;  %v985_v18 = vmul.f32 0.125, %v964_v60 }
 0x28d   :  { %v984_v19 = vadd.f32 %v983_v11, %v982_v14  ;;  %v986_v20 = vmul.f32 0.125, %v970_v17 }
 0x28e   :  { %v987_v21 = vmul.f32 0.125, %v978_v13  ;;  %v989_v22 = vmul.f32 %v985_v18, %v985_v18  ;;  %v995_v31 = vsub.f32 %v1498_v51, %v985_v18  ;;  %v1438_v13 = vld [vmem:[%s1958_s8] ss:$0 sm:$0xff] }
 0x28f   :  { %v988_v23 = vmul.f32 0.125, %v984_v19  ;;  %v990_v24 = vmul.f32 %v986_v20, %v986_v20  ;;  %v996_v33 = vsub.f32 %v1499_v53, %v986_v20 }
 0x290   :  { %v991_v25 = vsub.f32 %v987_v21, %v989_v22 }
 0x291   :  { %v992_v26 = vsub.f32 %v988_v23, %v990_v24 }
 0x292   :  { %v993_v27 = vmax.f32 %v991_v25, 0.0 }
 0x293   :  { %v994_v28 = vmax.f32 %v992_v26, 0.0 }
 0x294   :  { %v997_v29 = vadd.f32 1e-05, %v993_v27 }
 0x295   :  { %v998_v30 = vadd.f32 1e-05, %v994_v28 }
 0x296   :  { %1693 = vrsqrt.f32 %v997_v29 }
 0x297   :  { %1695 = vrsqrt.f32 %v998_v30 }
 0x2a0   :  { %v1694_v32 = vpop.eup %1693 }
 0x2a1   :  { %v1696_v10 = vpop.eup %1695  ;;  %v1001_v34 = vmul.f32 %v1694_v32, %v995_v31 }
 0x2a2   :  { %v1002_v35 = vmul.f32 %v1696_v10, %v996_v33 }
 0x2a3   :  { %v1003_v36 = vmax.f32 %v1001_v34, 0.0 }
 0x2a4   :  { %v1004_v37 = vmax.f32 %v1002_v35, 0.0 }
 0x2a5   :  { %v1005_v39 = vpack.c.bf16 %v1003_v36, %v1003_v36 }
 0x2a6   :  { %v1006_v38 = vpack.c.bf16 %v1004_v37, %v1004_v37 }
 0x2a8   :  { %1174 = vmatprep.mubr.bf16.mxu1 %v1006_v38 }
 0x2a9   :  { %1175 = vmatmul.mubr.bf16.vlgmr.msra.gmra.mrb[8].mxu1 %v1005_v39 }
 0x2aa   :  { %1479 = vmatpush3.bf16.msra.mxu1 %v1677_v40  ;;  %1494 = vmatprep.mubr.msk.bf16.mxu1 %vm1805_vm0, %v1804_v41 }
 0x2ab   :  { %1480 = vmatprep.subr.bf16.mxu1 %v1804_v41 }
 0x2ae   :  { %1481 = vmatpush3.bf16.msra.mxu1 %v1678_v42 }
 0x2af   :  { %1482 = vmatprep.subr.bf16.mxu1 %v1804_v41 }
 0x2b2   :  { %1483 = vmatpush3.bf16.msra.mxu1 %v1679_v43 }
 0x2b3   :  { %1484 = vmatprep.subr.bf16.mxu1 %v1804_v41 }
 0x2b6   :  { %1485 = vmatpush3.bf16.msra.mxu1 %v1680_v44 }
 0x2b7   :  { %1486 = vmatprep.subr.bf16.mxu1 %v1804_v41 }
 0x2ba   :  { %1487 = vmatpush3.bf16.msra.mxu1 %v1681_v45 }
 0x2bb   :  { %1488 = vmatprep.subr.bf16.mxu1 %v1804_v41 }
 0x2be   :  { %1489 = vmatpush3.bf16.msra.mxu1 %v1682_v46 }
 0x2bf   :  { %1490 = vmatprep.subr.bf16.mxu1 %v1804_v41 }
 0x2c2   :  { %1491 = vmatpush3.bf16.msra.mxu1 %v1683_v47 }
 0x2c3   :  { %1492 = vmatprep.subr.bf16.mxu1 %v1804_v41 }
 0x2c6   :  { %1493 = vmatpush3.bf16.msra.mxu1 %v1684_v48 }
 0x37c   :  { %v1463_v49 = vpop.f32.mrb[8].mxu1 }
 0x37d   :  { %v1464_v51 = vpop.f32.mrb[9].mxu1 }
 0x37e   :  { %v1465_v52 = vadd.f32 %v1464_v51, %v1463_v49  ;;  %v1466_v53 = vpop.f32.mrb[10].mxu1 }
 0x37f   :  { %v1467_v54 = vpop.f32.mrb[11].mxu1 }
 0x380   :  { %v1177_v55 = vadd.f32 %v1465_v52, %v1421_v50 }
 0x382   :  { %v1182_v56 = vrot.slane %v1177_v55, 4  ;;  %v1188_v57 = vmul.f32 %v1177_v55, %v1177_v55 }
 0x384   :  { %v1183_v58 = vadd.f32 %v1182_v56, %v1177_v55  ;;  %v1189_v59 = vrot.slane %v1188_v57, 4 }
 0x386   :  { %v1184_v61 = vrot.slane %v1183_v58, 2  ;;  %v1190_v62 = vadd.f32 %v1189_v59, %v1188_v57 }
 0x388   :  { %v1185_v63 = vadd.f32 %v1184_v61, %v1183_v58  ;;  %v1191_v0 = vrot.slane %v1190_v62, 2 }
 0x38a   :  { %v1186_v1 = vrot.slane %v1185_v63, 1  ;;  %v1192_v2 = vadd.f32 %v1191_v0, %v1190_v62 }
 0x38c   :  { %v1193_v5 = vrot.slane %v1192_v2, 1  ;;  %v1187_v3 = vadd.f32 %v1186_v1, %v1185_v63 }
 0x38e   :  { %v1194_v4 = vadd.f32 %v1193_v5, %v1192_v2  ;;  %v1195_v7 = vmul.f32 0.125, %v1187_v3 }
 0x390   :  { %v1196_v8 = vmul.f32 0.125, %v1194_v4  ;;  %v1197_v9 = vmul.f32 %v1195_v7, %v1195_v7  ;;  %v1200_v15 = vsub.f32 %v1177_v55, %v1195_v7 }
 0x392   :  { %v1198_v12 = vsub.f32 %v1196_v8, %v1197_v9 }
 0x394   :  { %v1199_v6 = vmax.f32 %v1198_v12, 0.0 }
 0x396   :  { %v1201_v14 = vadd.f32 1e-05, %v1199_v6 }
 0x398   :  { %1697 = vrsqrt.f32 %v1201_v14 }
 0x3a2   :  { %v1698_v60 = vpop.eup %1697 }
 0x3a3   :  { %v1203_v16 = vmul.f32 %v1698_v60, %v1200_v15 }
 0x3a5   :  { %v1204_v11 = vmax.f32 %v1203_v16, 0.0 }
 0x3a7   :  { %v1205_v17 = vpack.c.bf16 %v1204_v11, %v1204_v11 }
 0x3a9   :  { %1495 = vmatmul.mubr.bf16.vlgmr.msra.gmra.mrb[12].mxu1 %v1205_v17 }
 0x47c   :  { %v1311_v18 = vpop.f32.mrb[12].mxu1 }
 0x47d   :  { %v1312_v19 = vadd.f32 %v1438_v13, %v1311_v18  ;;  %v1496_v20 = vpop.f32.mrb[13].mxu1 }
 0x47e   :  { %v1314_v21 = vpop.f32.mrb[14].mxu1 }
 0x47f   :  { %1317 = vst [vmem:[%s1959_s9] sm:$0xff] %v1312_v19  ;;  %v1497_v22 = vpop.f32.mrb[15].mxu1 }
 0x480   :  { %1322 = vsyncpa [#allocation3], 1 }
 0x481   :  { %1323 = vsyncpa [#allocation5], 1 }
 0x482   :  { %1324 = vsyncpa [#allocation8], 1 }

</bundles_post_ra>
